<compile_context>
chip_gen: v6e
topology: v6e:2x2x1
jax: 0.10.0
libtpu: 0.0.40
codegen_flags: <defaults>
</compile_context>

<pallas_src>
import jax
import jax.numpy as jnp
from jax.experimental import pallas as pl
from jax.experimental.pallas import tpu as pltpu

LANE = 128     # TPU lane width / MXU column granularity
SUBLANE = 8    # sublane granularity (min row tile)


def _round_up(x, m):
    return ((x + m - 1) // m) * m


def _vmem_limit_bytes():
    """Generation-aware scoped-VMEM limit (~13/16 of physical per-TC VMEM)."""
    try:
        kind = jax.devices()[0].device_kind.lower()
    except Exception:  # pragma: no cover - defensive
        kind = ""
    if "v7" in kind or "7x" in kind:
        physical = 64 * 1024 * 1024      # v7x: 64 MiB per TensorCore
    else:
        physical = 128 * 1024 * 1024     # v4 / v5e / v6e: 128 MiB
    return (physical // 16) * 13         # ~52 MiB on v7x, ~104 MiB otherwise


# ---------------------------------------------------------------------------
# Kernel
# ---------------------------------------------------------------------------
def mlp_kernel(x_ref,
               w1_ref, b1_ref, w2_ref, b2_ref, w3_ref, b3_ref,   # encoder
               w4_ref, b4_ref, w5_ref, b5_ref, w6_ref, b6_ref,   # decoder
               out_ref):
    """One (TM, D_pad) batch tile through the full encoder+decoder."""
    # Inter-layer activations are stored in the weight dtype (bf16 halves the
    # VMEM scratch + vld/vst traffic); accumulation/bias/ReLU stay f32.
    act_dtype = w1_ref.dtype

    def dense(h, w_ref, b_ref, relu):
        y = jnp.dot(h, w_ref[...], preferred_element_type=jnp.float32)
        y = y + b_ref[...]
        if relu:
            y = jnp.maximum(y, 0.0)
            y = y.astype(act_dtype)
        return y

    h = x_ref[...].astype(act_dtype)

    # Encoder: Linear->ReLU, Linear->ReLU, Linear->ReLU
    h = dense(h, w1_ref, b1_ref, relu=True)
    h = dense(h, w2_ref, b2_ref, relu=True)
    h = dense(h, w3_ref, b3_ref, relu=True)

    # Decoder: Linear->ReLU, Linear->ReLU, Linear (f32 result)
    h = dense(h, w4_ref, b4_ref, relu=True)
    h = dense(h, w5_ref, b5_ref, relu=True)
    h = dense(h, w6_ref, b6_ref, relu=False)

    out_ref[...] = h.astype(out_ref.dtype)


# ---------------------------------------------------------------------------
# Wrapper
# ---------------------------------------------------------------------------
def mlp_forward(X, padded_params, *, tm=None):
    """X: (B, L, C) float32.  padded_params: output of pad_params()."""
    B, L, C = X.shape
    D = L * C
    D_pad = padded_params["w1"].shape[0]          # lane-padded input features

    # Adaptive batch tile: feed the MXU with up to 256 rows, but don't blow a
    # tiny batch up to a full 128/256-row tile.
    if tm is None:
        tm = _round_up(min(max(B, 1), 256), SUBLANE)
    B_pad = _round_up(max(B, 1), tm)

    # Flatten and zero-pad (padded rows/cols contribute exact zeros).
    x2d = X.reshape(B, D)
    if B_pad != B or D_pad != D:
        x2d = jnp.pad(x2d, ((0, B_pad - B), (0, D_pad - D)))

    weight_args = []
    for i in range(1, 7):
        weight_args.append(padded_params[f"w{i}"])
        weight_args.append(padded_params[f"b{i}"])

    num_steps = B_pad // tm
    grid = (num_steps,)

    x_spec = pl.BlockSpec((tm, D_pad), lambda i: (i, 0))
    out_spec = pl.BlockSpec((tm, D_pad), lambda i: (i, 0))
    # Whole-array VMEM residency for weights/biases: single copy, outside the
    # block pipeline (no 2x double-buffering of the weight footprint).
    resident = pl.BlockSpec(memory_space=pltpu.MemorySpace.VMEM)

    vmem_limit = _vmem_limit_bytes()

    # Trace-time budget check: resident weights/biases + double-buffered
    # x/out tiles + ~3 inter-layer activation slabs of compiler scratch.
    weight_bytes = sum(int(a.size) * a.dtype.itemsize for a in weight_args)
    act_bytes = (2 * 2 * tm * D_pad * 4) + (3 * tm * D_pad * 4)
    if weight_bytes + act_bytes > vmem_limit:
        raise ValueError(
            f"Resident-weight MLP does not fit VMEM budget "
            f"({(weight_bytes + act_bytes) / 2**20:.1f} MiB > "
            f"{vmem_limit / 2**20:.1f} MiB); use bf16 weights, a smaller tm, "
            f"or stream w1/w6 from HBM (see TODO at top of file).")

    # Megacore / 2-TC sharding of the batch axis only pays off with enough
    # grid steps; otherwise it just duplicates the resident weights per core.
    semantics = ("parallel",) if num_steps >= 4 else ("arbitrary",)

    out2d = pl.pallas_call(
        mlp_kernel,
        out_shape=jax.ShapeDtypeStruct((B_pad, D_pad), jnp.float32),
        grid=grid,
        in_specs=[x_spec] + [resident] * 12,
        out_specs=out_spec,
        compiler_params=pltpu.CompilerParams(
            dimension_semantics=semantics,
            vmem_limit_bytes=vmem_limit,
        ),
    )(x2d, *weight_args)

    return out2d[:B, :D].reshape(B, L, C)


# ---------------------------------------------------------------------------
# Parameters
# ---------------------------------------------------------------------------
def init_params(key, seq_len, num_channels, latent_space_size):
    """nn.Linear-style init (uniform +/- 1/sqrt(fan_in)).

    Weights stored transposed: (in_features, out_features); biases (1, out).
    Unpadded -- semantics identical to the PyTorch module.
    """
    D = seq_len * num_channels
    dims = [
        (D, D // 2),                  # encoder.linear1
        (D // 2, D // 4),             # encoder.linear2
        (D // 4, latent_space_size),  # encoder.linear3
        (latent_space_size, D // 4),  # decoder.linear1
        (D // 4, D // 2),             # decoder.linear2
        (D // 2, D),                  # decoder.linear3
    ]
    params = {}
    for i, (fan_in, fan_out) in enumerate(dims, start=1):
        key, kw, kb = jax.random.split(key, 3)
        bound = 1.0 / (fan_in ** 0.5)
        params[f"w{i}"] = jax.random.uniform(
            kw, (fan_in, fan_out), jnp.float32, -bound, bound)
        params[f"b{i}"] = jax.random.uniform(
            kb, (1, fan_out), jnp.float32, -bound, bound)
    return params


def pad_params(params, weight_dtype=jnp.bfloat16):
    """Zero-pad every layer's feature dims to multiples of 128 lanes.

    INVARIANT: padded weight rows/cols AND padded bias entries must be exactly
    zero -- that is what keeps padded lanes at 0 through every Linear+ReLU so
    the real outputs are unchanged.  Do not change the padding fill value.

    Weights are cast to `weight_dtype` (bf16 by default: MXU-native on
    v5e/v6e/v7x and half the weight-DMA bytes); biases stay f32.
    Use weight_dtype=jnp.float32 for the exact-forward mode.
    """
    padded = {}
    for i in range(1, 7):
        w = params[f"w{i}"]
        b = params[f"b{i}"]
        fi, fo = w.shape
        fi_p = _round_up(fi, LANE)
        fo_p = _round_up(fo, LANE)
        wp = jnp.zeros((fi_p, fo_p), weight_dtype)
        wp = wp.at[:fi, :fo].set(w.astype(weight_dtype))
        bp = jnp.zeros((1, fo_p), jnp.float32)
        bp = bp.at[:, :fo].set(b)
        padded[f"w{i}"] = wp
        padded[f"b{i}"] = bp
    return padded


# ---------------------------------------------------------------------------
# Pure-JAX reference (unpadded, f32)
# ---------------------------------------------------------------------------
def mlp_reference(X, params):
    B, L, C = X.shape
    h = X.reshape(B, L * C)
    h = jnp.maximum(h @ params["w1"] + params["b1"], 0.0)
    h = jnp.maximum(h @ params["w2"] + params["b2"], 0.0)
    z = jnp.maximum(h @ params["w3"] + params["b3"], 0.0)
    d = jnp.maximum(z @ params["w4"] + params["b4"], 0.0)
    d = jnp.maximum(d @ params["w5"] + params["b5"], 0.0)
    out = d @ params["w6"] + params["b6"]
    return out.reshape(B, L, C)


# ---------------------------------------------------------------------------
# Main
# ---------------------------------------------------------------------------
if __name__ == "__main__":
    # Small shapes: batch=2, seq_len=8, channels=4 -> input_size D=32, latent=8
    B, L, C = 2, 8, 4
    latent = 8

    key = jax.random.PRNGKey(0)
    key, kx = jax.random.split(key)
    X = jax.random.normal(kx, (B, L, C), jnp.float32)
    params = init_params(key, L, C, latent)

    ref = mlp_reference(X, params)

    forward = jax.jit(mlp_forward)

    # Exact mode: f32 weights + f32 activations -> bitwise-equivalent math to
    # the PyTorch module's forward pass.
    p_f32 = pad_params(params, jnp.float32)
    out = jax.block_until_ready(forward(X, p_f32))
    assert out.shape == (B, L, C)
    assert jnp.allclose(out, ref, atol=1e-5, rtol=1e-5), "f32 mismatch vs reference"

    # Fast mode (default): bf16 weights + bf16 inter-layer activations,
    # f32 accumulation/bias/ReLU.  Precision mode, not exact-forward mode.
    p_bf16 = pad_params(params)
    out_bf = jax.block_until_ready(forward(X, p_bf16))
    assert out_bf.shape == (B, L, C)
    assert jnp.allclose(out_bf, ref, atol=5e-2, rtol=5e-2), "bf16 mismatch vs reference"

    print("KERNEL_OK")
</pallas_src>

<mosaic_0001>
module attributes {stable_mosaic.version = 11 : i64} {
  func.func @mlp_kernel(%arg0: i32, %arg1: memref<8x128xf32, #tpu.memory_space<vmem>>, %arg2: memref<128x128xf32, #tpu.memory_space<vmem>>, %arg3: memref<1x128xf32, #tpu.memory_space<vmem>>, %arg4: memref<128x128xf32, #tpu.memory_space<vmem>>, %arg5: memref<1x128xf32, #tpu.memory_space<vmem>>, %arg6: memref<128x128xf32, #tpu.memory_space<vmem>>, %arg7: memref<1x128xf32, #tpu.memory_space<vmem>>, %arg8: memref<128x128xf32, #tpu.memory_space<vmem>>, %arg9: memref<1x128xf32, #tpu.memory_space<vmem>>, %arg10: memref<128x128xf32, #tpu.memory_space<vmem>>, %arg11: memref<1x128xf32, #tpu.memory_space<vmem>>, %arg12: memref<128x128xf32, #tpu.memory_space<vmem>>, %arg13: memref<1x128xf32, #tpu.memory_space<vmem>>, %arg14: memref<8x128xf32, #tpu.memory_space<vmem>>) attributes {dimension_semantics = [#tpu.dimension_semantics<arbitrary>], iteration_bounds = array<i64: 1>, scalar_prefetch = 0 : i64, scratch_operands = 0 : i64, tpu.core_type = #tpu.core_type<tc>, window_params = [{transform_indices = @transform_0, window_bounds = array<i64: 8, 128>}, {pipeline_mode = #tpu.pipeline_mode<synchronous>, transform_indices = @transform_1, window_bounds = array<i64: 128, 128>}, {pipeline_mode = #tpu.pipeline_mode<synchronous>, transform_indices = @transform_2, window_bounds = array<i64: 1, 128>}, {pipeline_mode = #tpu.pipeline_mode<synchronous>, transform_indices = @transform_3, window_bounds = array<i64: 128, 128>}, {pipeline_mode = #tpu.pipeline_mode<synchronous>, transform_indices = @transform_4, window_bounds = array<i64: 1, 128>}, {pipeline_mode = #tpu.pipeline_mode<synchronous>, transform_indices = @transform_5, window_bounds = array<i64: 128, 128>}, {pipeline_mode = #tpu.pipeline_mode<synchronous>, transform_indices = @transform_6, window_bounds = array<i64: 1, 128>}, {pipeline_mode = #tpu.pipeline_mode<synchronous>, transform_indices = @transform_7, window_bounds = array<i64: 128, 128>}, {pipeline_mode = #tpu.pipeline_mode<synchronous>, transform_indices = @transform_8, window_bounds = array<i64: 1, 128>}, {pipeline_mode = #tpu.pipeline_mode<synchronous>, transform_indices = @transform_9, window_bounds = array<i64: 128, 128>}, {pipeline_mode = #tpu.pipeline_mode<synchronous>, transform_indices = @transform_10, window_bounds = array<i64: 1, 128>}, {pipeline_mode = #tpu.pipeline_mode<synchronous>, transform_indices = @transform_11, window_bounds = array<i64: 128, 128>}, {pipeline_mode = #tpu.pipeline_mode<synchronous>, transform_indices = @transform_12, window_bounds = array<i64: 1, 128>}, {transform_indices = @transform_13, window_bounds = array<i64: 8, 128>}]} {
    %c0 = arith.constant 0 : index
    %c0_0 = arith.constant 0 : index
    %0 = vector.load %arg1[%c0, %c0_0] : memref<8x128xf32, #tpu.memory_space<vmem>>, vector<8x128xf32>
    %c0_1 = arith.constant 0 : index
    %c0_2 = arith.constant 0 : index
    %1 = vector.load %arg2[%c0_1, %c0_2] : memref<128x128xf32, #tpu.memory_space<vmem>>, vector<128x128xf32>
    %cst = arith.constant dense<0.000000e+00> : vector<8x128xf32>
    %2 = tpu.matmul %0, %1, %cst {dimension_numbers = #tpu.dot_dimension_numbers<[1], [0], [0], [1], [0, 0, 1, 1], [], []>} : vector<8x128xf32>, vector<128x128xf32>, vector<8x128xf32> -> vector<8x128xf32>
    %c0_3 = arith.constant 0 : index
    %c0_4 = arith.constant 0 : index
    %3 = vector.load %arg3[%c0_3, %c0_4] : memref<1x128xf32, #tpu.memory_space<vmem>>, vector<1x128xf32>
    %4 = vector.broadcast %3 : vector<1x128xf32> to vector<8x128xf32>
    %5 = arith.addf %2, %4 : vector<8x128xf32>
    %cst_5 = arith.constant 0.000000e+00 : f32
    %6 = vector.broadcast %cst_5 : f32 to vector<8x128xf32>
    %7 = arith.maximumf %5, %6 : vector<8x128xf32>
    %c0_6 = arith.constant 0 : index
    %c0_7 = arith.constant 0 : index
    %8 = vector.load %arg4[%c0_6, %c0_7] : memref<128x128xf32, #tpu.memory_space<vmem>>, vector<128x128xf32>
    %cst_8 = arith.constant dense<0.000000e+00> : vector<8x128xf32>
    %9 = tpu.matmul %7, %8, %cst_8 {dimension_numbers = #tpu.dot_dimension_numbers<[1], [0], [0], [1], [0, 0, 1, 1], [], []>} : vector<8x128xf32>, vector<128x128xf32>, vector<8x128xf32> -> vector<8x128xf32>
    %c0_9 = arith.constant 0 : index
    %c0_10 = arith.constant 0 : index
    %10 = vector.load %arg5[%c0_9, %c0_10] : memref<1x128xf32, #tpu.memory_space<vmem>>, vector<1x128xf32>
    %11 = vector.broadcast %10 : vector<1x128xf32> to vector<8x128xf32>
    %12 = arith.addf %9, %11 : vector<8x128xf32>
    %cst_11 = arith.constant 0.000000e+00 : f32
    %13 = vector.broadcast %cst_11 : f32 to vector<8x128xf32>
    %14 = arith.maximumf %12, %13 : vector<8x128xf32>
    %c0_12 = arith.constant 0 : index
    %c0_13 = arith.constant 0 : index
    %15 = vector.load %arg6[%c0_12, %c0_13] : memref<128x128xf32, #tpu.memory_space<vmem>>, vector<128x128xf32>
    %cst_14 = arith.constant dense<0.000000e+00> : vector<8x128xf32>
    %16 = tpu.matmul %14, %15, %cst_14 {dimension_numbers = #tpu.dot_dimension_numbers<[1], [0], [0], [1], [0, 0, 1, 1], [], []>} : vector<8x128xf32>, vector<128x128xf32>, vector<8x128xf32> -> vector<8x128xf32>
    %c0_15 = arith.constant 0 : index
    %c0_16 = arith.constant 0 : index
    %17 = vector.load %arg7[%c0_15, %c0_16] : memref<1x128xf32, #tpu.memory_space<vmem>>, vector<1x128xf32>
    %18 = vector.broadcast %17 : vector<1x128xf32> to vector<8x128xf32>
    %19 = arith.addf %16, %18 : vector<8x128xf32>
    %cst_17 = arith.constant 0.000000e+00 : f32
    %20 = vector.broadcast %cst_17 : f32 to vector<8x128xf32>
    %21 = arith.maximumf %19, %20 : vector<8x128xf32>
    %c0_18 = arith.constant 0 : index
    %c0_19 = arith.constant 0 : index
    %22 = vector.load %arg8[%c0_18, %c0_19] : memref<128x128xf32, #tpu.memory_space<vmem>>, vector<128x128xf32>
    %cst_20 = arith.constant dense<0.000000e+00> : vector<8x128xf32>
    %23 = tpu.matmul %21, %22, %cst_20 {dimension_numbers = #tpu.dot_dimension_numbers<[1], [0], [0], [1], [0, 0, 1, 1], [], []>} : vector<8x128xf32>, vector<128x128xf32>, vector<8x128xf32> -> vector<8x128xf32>
    %c0_21 = arith.constant 0 : index
    %c0_22 = arith.constant 0 : index
    %24 = vector.load %arg9[%c0_21, %c0_22] : memref<1x128xf32, #tpu.memory_space<vmem>>, vector<1x128xf32>
    %25 = vector.broadcast %24 : vector<1x128xf32> to vector<8x128xf32>
    %26 = arith.addf %23, %25 : vector<8x128xf32>
    %cst_23 = arith.constant 0.000000e+00 : f32
    %27 = vector.broadcast %cst_23 : f32 to vector<8x128xf32>
    %28 = arith.maximumf %26, %27 : vector<8x128xf32>
    %c0_24 = arith.constant 0 : index
    %c0_25 = arith.constant 0 : index
    %29 = vector.load %arg10[%c0_24, %c0_25] : memref<128x128xf32, #tpu.memory_space<vmem>>, vector<128x128xf32>
    %cst_26 = arith.constant dense<0.000000e+00> : vector<8x128xf32>
    %30 = tpu.matmul %28, %29, %cst_26 {dimension_numbers = #tpu.dot_dimension_numbers<[1], [0], [0], [1], [0, 0, 1, 1], [], []>} : vector<8x128xf32>, vector<128x128xf32>, vector<8x128xf32> -> vector<8x128xf32>
    %c0_27 = arith.constant 0 : index
    %c0_28 = arith.constant 0 : index
    %31 = vector.load %arg11[%c0_27, %c0_28] : memref<1x128xf32, #tpu.memory_space<vmem>>, vector<1x128xf32>
    %32 = vector.broadcast %31 : vector<1x128xf32> to vector<8x128xf32>
    %33 = arith.addf %30, %32 : vector<8x128xf32>
    %cst_29 = arith.constant 0.000000e+00 : f32
    %34 = vector.broadcast %cst_29 : f32 to vector<8x128xf32>
    %35 = arith.maximumf %33, %34 : vector<8x128xf32>
    %c0_30 = arith.constant 0 : index
    %c0_31 = arith.constant 0 : index
    %36 = vector.load %arg12[%c0_30, %c0_31] : memref<128x128xf32, #tpu.memory_space<vmem>>, vector<128x128xf32>
    %cst_32 = arith.constant dense<0.000000e+00> : vector<8x128xf32>
    %37 = tpu.matmul %35, %36, %cst_32 {dimension_numbers = #tpu.dot_dimension_numbers<[1], [0], [0], [1], [0, 0, 1, 1], [], []>} : vector<8x128xf32>, vector<128x128xf32>, vector<8x128xf32> -> vector<8x128xf32>
    %c0_33 = arith.constant 0 : index
    %c0_34 = arith.constant 0 : index
    %38 = vector.load %arg13[%c0_33, %c0_34] : memref<1x128xf32, #tpu.memory_space<vmem>>, vector<1x128xf32>
    %39 = vector.broadcast %38 : vector<1x128xf32> to vector<8x128xf32>
    %40 = arith.addf %37, %39 : vector<8x128xf32>
    %c0_35 = arith.constant 0 : index
    %c0_36 = arith.constant 0 : index
    %41 = vector.load %arg14[%c0_35, %c0_36] : memref<8x128xf32, #tpu.memory_space<vmem>>, vector<8x128xf32>
    tpu.vector_store %arg14[%c0_35, %c0_36], %40 {strides = array<i32>} : memref<8x128xf32, #tpu.memory_space<vmem>>, vector<8x128xf32>,
    return
  }
  func.func @transform_0(%arg0: i32) -> (i32, i32) {
    %c0_i32 = arith.constant 0 : i32
    %c0_i32_0 = arith.constant 0 : i32
    return %arg0, %c0_i32 : i32, i32
  }
  func.func @transform_1(%arg0: i32) -> (i32, i32) {
    %c0_i32 = arith.constant 0 : i32
    %c0_i32_0 = arith.constant 0 : i32
    %c0_i32_1 = arith.constant 0 : i32
    return %c0_i32, %c0_i32_0 : i32, i32
  }
  func.func @transform_2(%arg0: i32) -> (i32, i32) {
    %c0_i32 = arith.constant 0 : i32
    %c0_i32_0 = arith.constant 0 : i32
    %c0_i32_1 = arith.constant 0 : i32
    return %c0_i32, %c0_i32_0 : i32, i32
  }
  func.func @transform_3(%arg0: i32) -> (i32, i32) {
    %c0_i32 = arith.constant 0 : i32
    %c0_i32_0 = arith.constant 0 : i32
    %c0_i32_1 = arith.constant 0 : i32
    return %c0_i32, %c0_i32_0 : i32, i32
  }
  func.func @transform_4(%arg0: i32) -> (i32, i32) {
    %c0_i32 = arith.constant 0 : i32
    %c0_i32_0 = arith.constant 0 : i32
    %c0_i32_1 = arith.constant 0 : i32
    return %c0_i32, %c0_i32_0 : i32, i32
  }
  func.func @transform_5(%arg0: i32) -> (i32, i32) {
    %c0_i32 = arith.constant 0 : i32
    %c0_i32_0 = arith.constant 0 : i32
    %c0_i32_1 = arith.constant 0 : i32
    return %c0_i32, %c0_i32_0 : i32, i32
  }
  func.func @transform_6(%arg0: i32) -> (i32, i32) {
    %c0_i32 = arith.constant 0 : i32
    %c0_i32_0 = arith.constant 0 : i32
    %c0_i32_1 = arith.constant 0 : i32
    return %c0_i32, %c0_i32_0 : i32, i32
  }
  func.func @transform_7(%arg0: i32) -> (i32, i32) {
    %c0_i32 = arith.constant 0 : i32
    %c0_i32_0 = arith.constant 0 : i32
    %c0_i32_1 = arith.constant 0 : i32
    return %c0_i32, %c0_i32_0 : i32, i32
  }
  func.func @transform_8(%arg0: i32) -> (i32, i32) {
    %c0_i32 = arith.constant 0 : i32
    %c0_i32_0 = arith.constant 0 : i32
    %c0_i32_1 = arith.constant 0 : i32
    return %c0_i32, %c0_i32_0 : i32, i32
  }
  func.func @transform_9(%arg0: i32) -> (i32, i32) {
    %c0_i32 = arith.constant 0 : i32
    %c0_i32_0 = arith.constant 0 : i32
    %c0_i32_1 = arith.constant 0 : i32
    return %c0_i32, %c0_i32_0 : i32, i32
  }
  func.func @transform_10(%arg0: i32) -> (i32, i32) {
    %c0_i32 = arith.constant 0 : i32
    %c0_i32_0 = arith.constant 0 : i32
    %c0_i32_1 = arith.constant 0 : i32
    return %c0_i32, %c0_i32_0 : i32, i32
  }
  func.func @transform_11(%arg0: i32) -> (i32, i32) {
    %c0_i32 = arith.constant 0 : i32
    %c0_i32_0 = arith.constant 0 : i32
    %c0_i32_1 = arith.constant 0 : i32
    return %c0_i32, %c0_i32_0 : i32, i32
  }
  func.func @transform_12(%arg0: i32) -> (i32, i32) {
    %c0_i32 = arith.constant 0 : i32
    %c0_i32_0 = arith.constant 0 : i32
    %c0_i32_1 = arith.constant 0 : i32
    return %c0_i32, %c0_i32_0 : i32, i32
  }
  func.func @transform_13(%arg0: i32) -> (i32, i32) {
    %c0_i32 = arith.constant 0 : i32
    %c0_i32_0 = arith.constant 0 : i32
    return %arg0, %c0_i32 : i32, i32
  }
}

</mosaic_0001>

<bundles_post_ra>
// kernel: mlp_forward.1
= control target key start
LH: loop header
LB: loop body
LE: loop exit
PB: predicated region body
PF: predicated region fallthrough
CT: control target
= control target key end

     0   :  { %18 = vsyncpa [#allocation3], 0  ;;  %s1403_s0 = inlined_call_operand.vmem [shape: f32[8,128], index: 0, kind: input, shape index: {}]   ;;  %s1404_s1 = inlined_call_operand.hbm [shape: f32[128,128], index: 1, kind: input, shape index: {}]   ;;  %s1405_s2 = inlined_call_operand.vmem [shape: f32[1,128], index: 2, kind: input, shape index: {}]   ;;  %s1406_s3 = inlined_call_operand.hbm [shape: f32[128,128], index: 3, kind: input, shape index: {}]   ;;  %s1407_s4 = inlined_call_operand.vmem [shape: f32[1,128], index: 4, kind: input, shape index: {}]   ;;  %s1408_s5 = inlined_call_operand.hbm [shape: f32[128,128], index: 5, kind: input, shape index: {}]   ;;  %s1409_s6 = inlined_call_operand.vmem [shape: f32[1,128], index: 6, kind: input, shape index: {}]   ;;  %s1410_s7 = inlined_call_operand.hbm [shape: f32[128,128], index: 7, kind: input, shape index: {}]   ;;  %s1411_s8 = inlined_call_operand.vmem [shape: f32[1,128], index: 8, kind: input, shape index: {}]   ;;  %s1412_s9 = inlined_call_operand.hbm [shape: f32[128,128], index: 9, kind: input, shape index: {}]   ;;  %s1413_s10 = inlined_call_operand.vmem [shape: f32[1,128], index: 10, kind: input, shape index: {}]   ;;  %s1414_s11 = inlined_call_operand.hbm [shape: f32[128,128], index: 11, kind: input, shape index: {}]   ;;  %s1415_s12 = inlined_call_operand.vmem [shape: f32[1,128], index: 12, kind: input, shape index: {}]   ;;  %s1416_s13 = inlined_call_operand.vmem [shape: f32[8,128], index: 13, kind: output, shape index: {}]  }
   0x1   :  { %19 = vsyncpa [#allocation5], 0 }
   0x2   :  { %20 = vsyncpa [#allocation8], 0 }
   0x3   :  { %21 = vsyncpa [#allocation11], 0  ;;  %s1155_s25 = smov [#allocation4]   ;;  %s1156_s27 = smov [#allocation7]  }
   0x4   :  { %s43_s26 = sshll.u32 %s1155_s25, 4  ;;  %s71_s28 = sshll.u32 %s1156_s27, 4  ;;  %s44_s26 = int_to_ptr.vmem [resolvable:$true] %s43_s26  ;;  %s72_s28 = int_to_ptr.vmem [resolvable:$true] %s71_s28 }
   0x5   :  { %s1035_s29 = scalar_lea.vmem %s44_s26, 2048  ;;  %p1040_p1 = scmp.lt.s32.totalorder %s44_s26, %s44_s26 }
   0x6   :  { %p1036_p0 = scmp.ne.s32.totalorder %s44_s26, %s1035_s29  ;;  %p1041_p2 = scmp.lt.s32.totalorder %s1035_s29, %s1035_s29 }
   0x8   :  { %p1042_p3 = por %p1041_p2, %p1040_p1 }
   0xa   :  { %p1043_p4 = pnand %p1042_p3, %p1036_p0 }
   0xc   :  { %1046 = shalt.err (!%p1043_p4)
}
   0xd   :  { %s1157_s30 = smov 128   ;;  %s1158_s14 = smov 8  }
   0xe   :  { %49 = dma.hbm_to_vmem [thread:$0]  %s1406_s3, 2048, %s44_s26, [#allocation5], %s1157_s30, %s1157_s30, %s1158_s14  }
   0xf   :  { %s1055_s17 = scalar_lea.vmem %s72_s28, 2048  ;;  %p1060_p6 = scmp.lt.s32.totalorder %s72_s28, %s72_s28 }
  0x10   :  { %p1056_p5 = scmp.ne.s32.totalorder %s72_s28, %s1055_s17  ;;  %p1061_p7 = scmp.lt.s32.totalorder %s1055_s17, %s1055_s17 }
  0x12   :  { %p1062_p8 = por %p1061_p7, %p1060_p6 }
  0x14   :  { %p1063_p9 = pnand %p1062_p8, %p1056_p5 }
  0x16   :  { %1066 = shalt.err (!%p1063_p9)
}
  0x17   :  { %77 = dma.hbm_to_vmem [thread:$0]  %s1410_s7, 2048, %s72_s28, [#allocation8], %s1157_s30, %s1157_s30, %s1158_s14  }
  0x18   :  { %s1159_s20 = smov [#allocation2]   ;;  %s1160_s22 = smov [#allocation6]  }
  0x19   :  { %s29_s21 = sshll.u32 %s1159_s20, 4  ;;  %s57_s23 = sshll.u32 %s1160_s22, 4  ;;  %s30_s21 = int_to_ptr.vmem [resolvable:$true] %s29_s21  ;;  %s58_s23 = int_to_ptr.vmem [resolvable:$true] %s57_s23 }
  0x1a   :  { %s1075_s3 = scalar_lea.vmem %s30_s21, 2048  ;;  %p1080_p11 = scmp.lt.s32.totalorder %s30_s21, %s30_s21 }
  0x1b   :  { %p1076_p10 = scmp.ne.s32.totalorder %s30_s21, %s1075_s3  ;;  %p1081_p12 = scmp.lt.s32.totalorder %s1075_s3, %s1075_s3 }
  0x1d   :  { %p1082_p13 = por %p1081_p12, %p1080_p11 }
  0x1f   :  { %p1083_p0 = pnand %p1082_p13, %p1076_p10 }
  0x21   :  { %1086 = shalt.err (!%p1083_p0)
}
  0x22   :  { %35 = dma.hbm_to_vmem [thread:$0]  %s1404_s1, 2048, %s30_s21, [#allocation3], %s1157_s30, %s1157_s30, %s1158_s14  }
  0x23   :  { %s1095_s7 = scalar_lea.vmem %s58_s23, 2048  ;;  %p1100_p2 = scmp.lt.s32.totalorder %s58_s23, %s58_s23 }
  0x24   :  { %p1096_p1 = scmp.ne.s32.totalorder %s58_s23, %s1095_s7  ;;  %p1101_p3 = scmp.lt.s32.totalorder %s1095_s7, %s1095_s7 }
  0x26   :  { %p1102_p4 = por %p1101_p3, %p1100_p2 }
  0x28   :  { %p1103_p5 = pnand %p1102_p4, %p1096_p1 }
  0x2a   :  { %1106 = shalt.err (!%p1103_p5)
}
  0x2b   :  { %63 = dma.hbm_to_vmem [thread:$0]  %s1408_s5, 2048, %s58_s23, [#allocation5], %s1157_s30, %s1157_s30, %s1158_s14  }
  0x2c   :  { %s1161_s28 = smov [#allocation9]   ;;  %s1162_s15 = smov [#allocation10]  }
  0x2d   :  { %s85_s29 = sshll.u32 %s1161_s28, 4  ;;  %s99_s16 = sshll.u32 %s1162_s15, 4  ;;  %s86_s29 = int_to_ptr.vmem [resolvable:$true] %s85_s29  ;;  %s100_s16 = int_to_ptr.vmem [resolvable:$true] %s99_s16 }
  0x2e   :  { %s1115_s1 = scalar_lea.vmem %s86_s29, 2048  ;;  %p1120_p7 = scmp.lt.s32.totalorder %s86_s29, %s86_s29 }
  0x2f   :  { %p1116_p6 = scmp.ne.s32.totalorder %s86_s29, %s1115_s1  ;;  %p1121_p8 = scmp.lt.s32.totalorder %s1115_s1, %s1115_s1 }
  0x31   :  { %p1122_p9 = por %p1121_p8, %p1120_p7 }
  0x33   :  { %p1123_p10 = pnand %p1122_p9, %p1116_p6 }
  0x35   :  { %1126 = shalt.err (!%p1123_p10)
}
  0x36   :  { %91 = dma.hbm_to_vmem [thread:$0]  %s1412_s9, 2048, %s86_s29, [#allocation8], %s1157_s30, %s1157_s30, %s1158_s14  }
  0x37   :  { %s1135_s5 = scalar_lea.vmem %s100_s16, 2048  ;;  %p1140_p12 = scmp.lt.s32.totalorder %s100_s16, %s100_s16 }
  0x38   :  { %p1136_p11 = scmp.ne.s32.totalorder %s100_s16, %s1135_s5  ;;  %p1141_p13 = scmp.lt.s32.totalorder %s1135_s5, %s1135_s5 }
  0x3a   :  { %p1142_p0 = por %p1141_p13, %p1140_p12 }
  0x3c   :  { %p1143_p1 = pnand %p1142_p0, %p1136_p11 }
  0x3e   :  { %1146 = shalt.err (!%p1143_p1)
}
  0x3f   :  { %105 = dma.hbm_to_vmem [thread:$0]  %s1414_s11, 2048, %s100_s16, [#allocation11], %s1157_s30, %s1157_s30, %s1158_s14  }
  0x40   :  { %1147 = dma.done.wait [#allocation3], 2048  }
  0x41   :  { %1148 = vsyncadd [#allocation3], 4294965248 }
  0x42   :  { %1149 = dma.done.wait [#allocation5], 4096  }
  0x43   :  { %1150 = vsyncadd [#allocation5], 4294963200 }
  0x44   :  { %1151 = dma.done.wait [#allocation8], 4096  }
  0x45   :  { %1152 = vsyncadd [#allocation8], 4294963200 }
  0x46   :  { %1153 = dma.done.wait [#allocation11], 2048  }
  0x47   :  { %1154 = vsyncadd [#allocation11], 4294965248  ;;  %v1163_v0 = vmov 0.0   ;;  %vm1164_vm0 = vmmov 0   ;;  %v142_v1 = vld [vmem:[#allocation2 + $0x78] sm:$0xff]  ;;  %v141_v2 = vld [vmem:[#allocation2 + $0x70] sm:$0xff] }
  0x48   :  { %807 = vmatprep.subr.mxu0 %v1163_v0  ;;  %839 = vmatprep.mubr.msk.f32.mxu0 %vm1164_vm0, %v1163_v0  ;;  %v140_v3 = vld [vmem:[#allocation2 + $0x68] sm:$0xff]  ;;  %v139_v4 = vld [vmem:[#allocation2 + $0x60] sm:$0xff]  ;;  %v236_v5 = vld [vmem:[#allocation4 + $0x78] sm:$0xff] }
  0x49   :  { %842 = vmatprep.subr.mxu1 %v1163_v0  ;;  %874 = vmatprep.mubr.msk.f32.mxu1 %vm1164_vm0, %v1163_v0  ;;  %v138_v6 = vld [vmem:[#allocation2 + $0x58] sm:$0xff]  ;;  %v235_v7 = vld [vmem:[#allocation4 + $0x70] sm:$0xff]  ;;  %v234_v8 = vld [vmem:[#allocation4 + $0x68] sm:$0xff] }
  0x4a   :  { %808 = vmatpush3.msra.mxu0 %v142_v1  ;;  %843 = vmatpush3.msra.mxu1 %v236_v5  ;;  %v137_v9 = vld [vmem:[#allocation2 + $0x50] sm:$0xff]  ;;  %v233_v10 = vld [vmem:[#allocation4 + $0x60] sm:$0xff]  ;;  %v136_v11 = vld [vmem:[#allocation2 + $0x48] sm:$0xff] }
  0x4b   :  { %809 = vmatprep.subr.mxu0 %v1163_v0  ;;  %844 = vmatprep.subr.mxu1 %v1163_v0  ;;  %v232_v12 = vld [vmem:[#allocation4 + $0x58] sm:$0xff]  ;;  %v135_v13 = vld [vmem:[#allocation2 + $0x40] sm:$0xff]  ;;  %v231_v14 = vld [vmem:[#allocation4 + $0x50] sm:$0xff] }
  0x4c   :  { %810 = vmatpush3.msra.mxu0 %v141_v2  ;;  %845 = vmatpush3.msra.mxu1 %v235_v7  ;;  %v134_v15 = vld [vmem:[#allocation2 + $0x38] sm:$0xff]  ;;  %v230_v16 = vld [vmem:[#allocation4 + $0x48] sm:$0xff]  ;;  %v133_v17 = vld [vmem:[#allocation2 + $0x30] sm:$0xff] }
  0x4d   :  { %811 = vmatprep.subr.mxu0 %v1163_v0  ;;  %846 = vmatprep.subr.mxu1 %v1163_v0  ;;  %v229_v18 = vld [vmem:[#allocation4 + $0x40] sm:$0xff]  ;;  %v132_v19 = vld [vmem:[#allocation2 + $0x28] sm:$0xff]  ;;  %v228_v20 = vld [vmem:[#allocation4 + $0x38] sm:$0xff] }
  0x4e   :  { %812 = vmatpush3.msra.mxu0 %v140_v3  ;;  %847 = vmatpush3.msra.mxu1 %v234_v8  ;;  %v131_v21 = vld [vmem:[#allocation2 + $0x20] sm:$0xff]  ;;  %v227_v22 = vld [vmem:[#allocation4 + $0x30] sm:$0xff]  ;;  %v130_v23 = vld [vmem:[#allocation2 + $0x18] sm:$0xff] }
  0x4f   :  { %813 = vmatprep.subr.mxu0 %v1163_v0  ;;  %848 = vmatprep.subr.mxu1 %v1163_v0  ;;  %v226_v24 = vld [vmem:[#allocation4 + $0x28] sm:$0xff]  ;;  %v129_v25 = vld [vmem:[#allocation2 + $0x10] sm:$0xff]  ;;  %v225_v26 = vld [vmem:[#allocation4 + $0x20] sm:$0xff] }
  0x50   :  { %814 = vmatpush3.msra.mxu0 %v139_v4  ;;  %849 = vmatpush3.msra.mxu1 %v233_v10  ;;  %v128_v27 = vld [vmem:[#allocation2 + $0x8] sm:$0xff]  ;;  %v224_v28 = vld [vmem:[#allocation4 + $0x18] sm:$0xff]  ;;  %v127_v29 = vld [vmem:[#allocation2] sm:$0xff] }
  0x51   :  { %815 = vmatprep.subr.mxu0 %v1163_v0  ;;  %850 = vmatprep.subr.mxu1 %v1163_v0  ;;  %v126_v30 = vld [vmem:[%s1403_s0] sm:$0xff]  ;;  %v223_v31 = vld [vmem:[#allocation4 + $0x10] sm:$0xff]  ;;  %v222_v32 = vld [vmem:[#allocation4 + $0x8] sm:$0xff] }
  0x52   :  { %816 = vmatpush3.msra.mxu0 %v138_v6  ;;  %851 = vmatpush3.msra.mxu1 %v232_v12  ;;  %v221_v33 = vld [vmem:[#allocation4] sm:$0xff]  ;;  %v330_v34 = vld [vmem:[#allocation6 + $0x78] sm:$0xff]  ;;  %v329_v35 = vld [vmem:[#allocation6 + $0x70] sm:$0xff] }
  0x53   :  { %817 = vmatprep.subr.mxu0 %v1163_v0  ;;  %852 = vmatprep.subr.mxu1 %v1163_v0  ;;  %v328_v36 = vld [vmem:[#allocation6 + $0x68] sm:$0xff]  ;;  %v327_v37 = vld [vmem:[#allocation6 + $0x60] sm:$0xff]  ;;  %v326_v38 = vld [vmem:[#allocation6 + $0x58] sm:$0xff] }
  0x54   :  { %818 = vmatpush3.msra.mxu0 %v137_v9  ;;  %853 = vmatpush3.msra.mxu1 %v231_v14  ;;  %v325_v39 = vld [vmem:[#allocation6 + $0x50] sm:$0xff]  ;;  %v324_v40 = vld [vmem:[#allocation6 + $0x48] sm:$0xff]  ;;  %v323_v41 = vld [vmem:[#allocation6 + $0x40] sm:$0xff] }
  0x55   :  { %819 = vmatprep.subr.mxu0 %v1163_v0  ;;  %854 = vmatprep.subr.mxu1 %v1163_v0  ;;  %v322_v42 = vld [vmem:[#allocation6 + $0x38] sm:$0xff]  ;;  %v321_v43 = vld [vmem:[#allocation6 + $0x30] sm:$0xff]  ;;  %v320_v44 = vld [vmem:[#allocation6 + $0x28] sm:$0xff] }
  0x56   :  { %820 = vmatpush3.msra.mxu0 %v136_v11  ;;  %855 = vmatpush3.msra.mxu1 %v230_v16  ;;  %v319_v45 = vld [vmem:[#allocation6 + $0x20] sm:$0xff]  ;;  %v318_v46 = vld [vmem:[#allocation6 + $0x18] sm:$0xff]  ;;  %v317_v52 = vld [vmem:[#allocation6 + $0x10] sm:$0xff] }
  0x57   :  { %821 = vmatprep.subr.mxu0 %v1163_v0  ;;  %856 = vmatprep.subr.mxu1 %v1163_v0  ;;  %v699_v47 = vld [vmem:[%s1405_s2] ss:$0 sm:$0xff]  ;;  %v316_v53 = vld [vmem:[#allocation6 + $0x8] sm:$0xff]  ;;  %v424_v55 = vld [vmem:[#allocation7 + $0x78] sm:$0xff] }
  0x58   :  { %822 = vmatpush3.msra.mxu0 %v135_v13  ;;  %857 = vmatpush3.msra.mxu1 %v229_v18  ;;  %v315_v54 = vld [vmem:[#allocation6] sm:$0xff]  ;;  %v423_v56 = vld [vmem:[#allocation7 + $0x70] sm:$0xff]  ;;  %v422_v57 = vld [vmem:[#allocation7 + $0x68] sm:$0xff] }
  0x59   :  { %823 = vmatprep.subr.mxu0 %v1163_v0  ;;  %858 = vmatprep.subr.mxu1 %v1163_v0  ;;  %v421_v58 = vld [vmem:[#allocation7 + $0x60] sm:$0xff]  ;;  %v420_v59 = vld [vmem:[#allocation7 + $0x58] sm:$0xff]  ;;  %v419_v60 = vld [vmem:[#allocation7 + $0x50] sm:$0xff] }
  0x5a   :  { %824 = vmatpush3.msra.mxu0 %v134_v15  ;;  %859 = vmatpush3.msra.mxu1 %v228_v20  ;;  %v418_v61 = vld [vmem:[#allocation7 + $0x48] sm:$0xff]  ;;  %v417_v62 = vld [vmem:[#allocation7 + $0x40] sm:$0xff]  ;;  %v416_v63 = vld [vmem:[#allocation7 + $0x38] sm:$0xff] }
  0x5b   :  { %825 = vmatprep.subr.mxu0 %v1163_v0  ;;  %860 = vmatprep.subr.mxu1 %v1163_v0  ;;  %v415_v1 = vld [vmem:[#allocation7 + $0x30] sm:$0xff]  ;;  %v414_v2 = vld [vmem:[#allocation7 + $0x28] sm:$0xff]  ;;  %v413_v3 = vld [vmem:[#allocation7 + $0x20] sm:$0xff] }
  0x5c   :  { %826 = vmatpush3.msra.mxu0 %v133_v17  ;;  %861 = vmatpush3.msra.mxu1 %v227_v22  ;;  %v412_v4 = vld [vmem:[#allocation7 + $0x18] sm:$0xff]  ;;  %v700_v5 = vld [vmem:[%s1407_s4] ss:$0 sm:$0xff]  ;;  %v411_v10 = vld [vmem:[#allocation7 + $0x10] sm:$0xff] }
  0x5d   :  { %827 = vmatprep.subr.mxu0 %v1163_v0  ;;  %862 = vmatprep.subr.mxu1 %v1163_v0  ;;  %v410_v11 = vld [vmem:[#allocation7 + $0x8] sm:$0xff]  ;;  %v409_v12 = vld [vmem:[#allocation7] sm:$0xff]  ;;  %v518_v13 = vld [vmem:[#allocation9 + $0x78] sm:$0xff] }
  0x5e   :  { %828 = vmatpush3.msra.mxu0 %v132_v19  ;;  %863 = vmatpush3.msra.mxu1 %v226_v24  ;;  %v517_v14 = vld [vmem:[#allocation9 + $0x70] sm:$0xff]  ;;  %v516_v15 = vld [vmem:[#allocation9 + $0x68] sm:$0xff]  ;;  %v515_v16 = vld [vmem:[#allocation9 + $0x60] sm:$0xff] }
  0x5f   :  { %829 = vmatprep.subr.mxu0 %v1163_v0  ;;  %864 = vmatprep.subr.mxu1 %v1163_v0  ;;  %v514_v17 = vld [vmem:[#allocation9 + $0x58] sm:$0xff]  ;;  %v513_v18 = vld [vmem:[#allocation9 + $0x50] sm:$0xff]  ;;  %v512_v19 = vld [vmem:[#allocation9 + $0x48] sm:$0xff] }
  0x60   :  { %830 = vmatpush3.msra.mxu0 %v131_v21  ;;  %865 = vmatpush3.msra.mxu1 %v225_v26  ;;  %v511_v20 = vld [vmem:[#allocation9 + $0x40] sm:$0xff]  ;;  %v510_v21 = vld [vmem:[#allocation9 + $0x38] sm:$0xff]  ;;  %v509_v22 = vld [vmem:[#allocation9 + $0x30] sm:$0xff] }
  0x61   :  { %831 = vmatprep.subr.mxu0 %v1163_v0  ;;  %866 = vmatprep.subr.mxu1 %v1163_v0  ;;  %v507_v24 = vld [vmem:[#allocation9 + $0x20] sm:$0xff] }
  0x62   :  { %832 = vmatpush3.msra.mxu0 %v130_v23  ;;  %867 = vmatpush3.msra.mxu1 %v224_v28  ;;  %v508_v23 = vld [vmem:[#allocation9 + $0x28] sm:$0xff]  ;;  %v701_v26 = vld [vmem:[%s1409_s6] ss:$0 sm:$0xff] }
  0x63   :  { %833 = vmatprep.subr.mxu0 %v1163_v0  ;;  %868 = vmatprep.subr.mxu1 %v1163_v0 }
  0x64   :  { %834 = vmatpush3.msra.mxu0 %v129_v25  ;;  %869 = vmatpush3.msra.mxu1 %v223_v31  ;;  %v506_v25 = vld [vmem:[#allocation9 + $0x18] sm:$0xff]  ;;  %v505_v31 = vld [vmem:[#allocation9 + $0x10] sm:$0xff] }
  0x65   :  { %835 = vmatprep.subr.mxu0 %v1163_v0  ;;  %870 = vmatprep.subr.mxu1 %v1163_v0 }
  0x66   :  { %836 = vmatpush3.msra.mxu0 %v128_v27  ;;  %871 = vmatpush3.msra.mxu1 %v222_v32  ;;  %v504_v32 = vld [vmem:[#allocation9 + $0x8] sm:$0xff] }
  0x67   :  { %837 = vmatprep.subr.mxu0 %v1163_v0  ;;  %872 = vmatprep.subr.mxu1 %v1163_v0 }
  0x68   :  { %838 = vmatpush3.msra.mxu0 %v127_v29  ;;  %873 = vmatpush3.msra.mxu1 %v221_v33  ;;  %v503_v33 = vld [vmem:[#allocation9] sm:$0xff] }
  0x69   :  { %840 = vmatmul.mubr.f32.vlgmr.msra.gmra.mxu0 %v126_v30  ;;  %877 = vmatprep.subr.mxu0 %v1163_v0 }
  0x6a   :  { %909 = vmatprep.mubr.msk.f32.mxu0 %vm1164_vm0, %v1163_v0  ;;  %912 = vmatprep.subr.mxu1 %v1163_v0 }
  0x6b   :  { %878 = vmatpush3.msra.mxu0 %v330_v34  ;;  %v612_v34 = vld [vmem:[#allocation10 + $0x78] sm:$0xff] }
  0x6c   :  { %879 = vmatprep.subr.mxu0 %v1163_v0 }
  0x6d   :  { %880 = vmatpush3.msra.mxu0 %v329_v35  ;;  %v611_v35 = vld [vmem:[#allocation10 + $0x70] sm:$0xff] }
  0x6e   :  { %881 = vmatprep.subr.mxu0 %v1163_v0 }
  0x6f   :  { %882 = vmatpush3.msra.mxu0 %v328_v36  ;;  %v610_v36 = vld [vmem:[#allocation10 + $0x68] sm:$0xff] }
  0x70   :  { %883 = vmatprep.subr.mxu0 %v1163_v0 }
  0x71   :  { %884 = vmatpush3.msra.mxu0 %v327_v37  ;;  %v609_v37 = vld [vmem:[#allocation10 + $0x60] sm:$0xff] }
  0x72   :  { %885 = vmatprep.subr.mxu0 %v1163_v0 }
  0x73   :  { %886 = vmatpush3.msra.mxu0 %v326_v38  ;;  %v608_v38 = vld [vmem:[#allocation10 + $0x58] sm:$0xff] }
  0x74   :  { %887 = vmatprep.subr.mxu0 %v1163_v0 }
  0x75   :  { %888 = vmatpush3.msra.mxu0 %v325_v39  ;;  %v607_v39 = vld [vmem:[#allocation10 + $0x50] sm:$0xff] }
  0x76   :  { %889 = vmatprep.subr.mxu0 %v1163_v0 }
  0x77   :  { %890 = vmatpush3.msra.mxu0 %v324_v40  ;;  %v606_v40 = vld [vmem:[#allocation10 + $0x48] sm:$0xff] }
  0x78   :  { %891 = vmatprep.subr.mxu0 %v1163_v0 }
  0x79   :  { %892 = vmatpush3.msra.mxu0 %v323_v41  ;;  %v605_v41 = vld [vmem:[#allocation10 + $0x40] sm:$0xff] }
  0x7a   :  { %893 = vmatprep.subr.mxu0 %v1163_v0 }
  0x7b   :  { %894 = vmatpush3.msra.mxu0 %v322_v42  ;;  %v604_v42 = vld [vmem:[#allocation10 + $0x38] sm:$0xff] }
  0x7c   :  { %895 = vmatprep.subr.mxu0 %v1163_v0 }
  0x7d   :  { %896 = vmatpush3.msra.mxu0 %v321_v43  ;;  %v603_v43 = vld [vmem:[#allocation10 + $0x30] sm:$0xff] }
  0x7e   :  { %897 = vmatprep.subr.mxu0 %v1163_v0 }
  0x7f   :  { %898 = vmatpush3.msra.mxu0 %v320_v44  ;;  %v602_v44 = vld [vmem:[#allocation10 + $0x28] sm:$0xff] }
  0x80   :  { %899 = vmatprep.subr.mxu0 %v1163_v0 }
  0x81   :  { %900 = vmatpush3.msra.mxu0 %v319_v45  ;;  %v601_v45 = vld [vmem:[#allocation10 + $0x20] sm:$0xff] }
  0x82   :  { %901 = vmatprep.subr.mxu0 %v1163_v0 }
  0x83   :  { %902 = vmatpush3.msra.mxu0 %v318_v46  ;;  %v600_v46 = vld [vmem:[#allocation10 + $0x18] sm:$0xff] }
  0x84   :  { %903 = vmatprep.subr.mxu0 %v1163_v0 }
  0x85   :  { %904 = vmatpush3.msra.mxu0 %v317_v52  ;;  %v599_v52 = vld [vmem:[#allocation10 + $0x10] sm:$0xff] }
  0x86   :  { %905 = vmatprep.subr.mxu0 %v1163_v0 }
  0x87   :  { %906 = vmatpush3.msra.mxu0 %v316_v53  ;;  %v598_v53 = vld [vmem:[#allocation10 + $0x8] sm:$0xff] }
  0x88   :  { %907 = vmatprep.subr.mxu0 %v1163_v0 }
  0x89   :  { %908 = vmatpush3.msra.mxu0 %v315_v54  ;;  %v597_v54 = vld [vmem:[#allocation10] sm:$0xff] }
  0x8a   :  { %947 = vmatprep.subr.mxu0 %v1163_v0 }
 0x129   :  { %v216_v48 = vpop.f32.mrf.mxu0 }
 0x12a   :  { %v217_v49 = vadd.f32 %v699_v47, %v216_v48  ;;  %v702_v47 = vld [vmem:[%s1411_s8] ss:$0 sm:$0xff] }
 0x12b   :  { %v841_v50 = vpop.f32.mrf.mxu0 }
 0x12c   :  { %v220_v51 = vmax.f32 %v217_v49, 0.0 }
 0x12e   :  { %875 = vmatmul.mubr.f32.vlgmr.msra.gmra.mxu1 %v220_v51 }
 0x12f   :  { %944 = vmatprep.mubr.msk.f32.mxu1 %vm1164_vm0, %v1163_v0  ;;  %913 = vmatpush3.msra.mxu1 %v424_v55  ;;  %v703_v55 = vld [vmem:[%s1413_s10] ss:$0 sm:$0xff] }
 0x130   :  { %914 = vmatprep.subr.mxu1 %v1163_v0 }
 0x131   :  { %915 = vmatpush3.msra.mxu1 %v423_v56 }
 0x132   :  { %916 = vmatprep.subr.mxu1 %v1163_v0 }
 0x133   :  { %917 = vmatpush3.msra.mxu1 %v422_v57 }
 0x134   :  { %918 = vmatprep.subr.mxu1 %v1163_v0 }
 0x135   :  { %919 = vmatpush3.msra.mxu1 %v421_v58 }
 0x136   :  { %920 = vmatprep.subr.mxu1 %v1163_v0 }
 0x137   :  { %921 = vmatpush3.msra.mxu1 %v420_v59 }
 0x138   :  { %922 = vmatprep.subr.mxu1 %v1163_v0 }
 0x139   :  { %923 = vmatpush3.msra.mxu1 %v419_v60  ;;  %v704_v60 = vld [vmem:[%s1415_s12] ss:$0 sm:$0xff] }
 0x13a   :  { %924 = vmatprep.subr.mxu1 %v1163_v0 }
 0x13b   :  { %925 = vmatpush3.msra.mxu1 %v418_v61 }
 0x13c   :  { %926 = vmatprep.subr.mxu1 %v1163_v0 }
 0x13d   :  { %927 = vmatpush3.msra.mxu1 %v417_v62 }
 0x13e   :  { %928 = vmatprep.subr.mxu1 %v1163_v0 }
 0x13f   :  { %929 = vmatpush3.msra.mxu1 %v416_v63 }
 0x140   :  { %930 = vmatprep.subr.mxu1 %v1163_v0 }
 0x141   :  { %931 = vmatpush3.msra.mxu1 %v415_v1 }
 0x142   :  { %932 = vmatprep.subr.mxu1 %v1163_v0 }
 0x143   :  { %933 = vmatpush3.msra.mxu1 %v414_v2 }
 0x144   :  { %934 = vmatprep.subr.mxu1 %v1163_v0 }
 0x145   :  { %935 = vmatpush3.msra.mxu1 %v413_v3 }
 0x146   :  { %936 = vmatprep.subr.mxu1 %v1163_v0 }
 0x147   :  { %937 = vmatpush3.msra.mxu1 %v412_v4 }
 0x148   :  { %938 = vmatprep.subr.mxu1 %v1163_v0 }
 0x149   :  { %939 = vmatpush3.msra.mxu1 %v411_v10 }
 0x14a   :  { %940 = vmatprep.subr.mxu1 %v1163_v0 }
 0x14b   :  { %941 = vmatpush3.msra.mxu1 %v410_v11 }
 0x14c   :  { %942 = vmatprep.subr.mxu1 %v1163_v0 }
 0x14d   :  { %943 = vmatpush3.msra.mxu1 %v409_v12 }
 0x14e   :  { %982 = vmatprep.subr.mxu1 %v1163_v0 }
 0x1ee   :  { %v310_v6 = vpop.f32.mrf.mxu1 }
 0x1ef   :  { %v311_v7 = vadd.f32 %v700_v5, %v310_v6 }
 0x1f0   :  { %v876_v8 = vpop.f32.mrf.mxu1 }
 0x1f1   :  { %v314_v9 = vmax.f32 %v311_v7, 0.0 }
 0x1f3   :  { %910 = vmatmul.mubr.f32.vlgmr.msra.gmra.mxu0 %v314_v9 }
 0x1f4   :  { %979 = vmatprep.mubr.msk.f32.mxu0 %vm1164_vm0, %v1163_v0  ;;  %948 = vmatpush3.msra.mxu0 %v518_v13 }
 0x1f5   :  { %949 = vmatprep.subr.mxu0 %v1163_v0 }
 0x1f6   :  { %950 = vmatpush3.msra.mxu0 %v517_v14 }
 0x1f7   :  { %951 = vmatprep.subr.mxu0 %v1163_v0 }
 0x1f8   :  { %952 = vmatpush3.msra.mxu0 %v516_v15 }
 0x1f9   :  { %953 = vmatprep.subr.mxu0 %v1163_v0 }
 0x1fa   :  { %954 = vmatpush3.msra.mxu0 %v515_v16 }
 0x1fb   :  { %955 = vmatprep.subr.mxu0 %v1163_v0 }
 0x1fc   :  { %956 = vmatpush3.msra.mxu0 %v514_v17 }
 0x1fd   :  { %957 = vmatprep.subr.mxu0 %v1163_v0 }
 0x1fe   :  { %958 = vmatpush3.msra.mxu0 %v513_v18 }
 0x1ff   :  { %959 = vmatprep.subr.mxu0 %v1163_v0 }
 0x200   :  { %960 = vmatpush3.msra.mxu0 %v512_v19 }
 0x201   :  { %961 = vmatprep.subr.mxu0 %v1163_v0 }
 0x202   :  { %962 = vmatpush3.msra.mxu0 %v511_v20 }
 0x203   :  { %963 = vmatprep.subr.mxu0 %v1163_v0 }
 0x204   :  { %964 = vmatpush3.msra.mxu0 %v510_v21 }
 0x205   :  { %965 = vmatprep.subr.mxu0 %v1163_v0 }
 0x206   :  { %966 = vmatpush3.msra.mxu0 %v509_v22 }
 0x207   :  { %967 = vmatprep.subr.mxu0 %v1163_v0 }
 0x208   :  { %968 = vmatpush3.msra.mxu0 %v508_v23 }
 0x209   :  { %969 = vmatprep.subr.mxu0 %v1163_v0 }
 0x20a   :  { %970 = vmatpush3.msra.mxu0 %v507_v24 }
 0x20b   :  { %971 = vmatprep.subr.mxu0 %v1163_v0 }
 0x20c   :  { %972 = vmatpush3.msra.mxu0 %v506_v25 }
 0x20d   :  { %973 = vmatprep.subr.mxu0 %v1163_v0 }
 0x20e   :  { %974 = vmatpush3.msra.mxu0 %v505_v31 }
 0x20f   :  { %975 = vmatprep.subr.mxu0 %v1163_v0 }
 0x210   :  { %976 = vmatpush3.msra.mxu0 %v504_v32 }
 0x211   :  { %977 = vmatprep.subr.mxu0 %v1163_v0 }
 0x212   :  { %978 = vmatpush3.msra.mxu0 %v503_v33 }
 0x2b3   :  { %v404_v27 = vpop.f32.mrf.mxu0 }
 0x2b4   :  { %v405_v28 = vadd.f32 %v701_v26, %v404_v27 }
 0x2b5   :  { %v911_v29 = vpop.f32.mrf.mxu0 }
 0x2b6   :  { %v408_v30 = vmax.f32 %v405_v28, 0.0 }
 0x2b8   :  { %945 = vmatmul.mubr.f32.vlgmr.msra.gmra.mxu1 %v408_v30 }
 0x2b9   :  { %1014 = vmatprep.mubr.msk.f32.mxu1 %vm1164_vm0, %v1163_v0  ;;  %983 = vmatpush3.msra.mxu1 %v612_v34 }
 0x2ba   :  { %984 = vmatprep.subr.mxu1 %v1163_v0 }
 0x2bb   :  { %985 = vmatpush3.msra.mxu1 %v611_v35 }
 0x2bc   :  { %986 = vmatprep.subr.mxu1 %v1163_v0 }
 0x2bd   :  { %987 = vmatpush3.msra.mxu1 %v610_v36 }
 0x2be   :  { %988 = vmatprep.subr.mxu1 %v1163_v0 }
 0x2bf   :  { %989 = vmatpush3.msra.mxu1 %v609_v37 }
 0x2c0   :  { %990 = vmatprep.subr.mxu1 %v1163_v0 }
 0x2c1   :  { %991 = vmatpush3.msra.mxu1 %v608_v38 }
 0x2c2   :  { %992 = vmatprep.subr.mxu1 %v1163_v0 }
 0x2c3   :  { %993 = vmatpush3.msra.mxu1 %v607_v39 }
 0x2c4   :  { %994 = vmatprep.subr.mxu1 %v1163_v0 }
 0x2c5   :  { %995 = vmatpush3.msra.mxu1 %v606_v40 }
 0x2c6   :  { %996 = vmatprep.subr.mxu1 %v1163_v0 }
 0x2c7   :  { %997 = vmatpush3.msra.mxu1 %v605_v41 }
 0x2c8   :  { %998 = vmatprep.subr.mxu1 %v1163_v0 }
 0x2c9   :  { %999 = vmatpush3.msra.mxu1 %v604_v42 }
 0x2ca   :  { %1000 = vmatprep.subr.mxu1 %v1163_v0 }
 0x2cb   :  { %1001 = vmatpush3.msra.mxu1 %v603_v43 }
 0x2cc   :  { %1002 = vmatprep.subr.mxu1 %v1163_v0 }
 0x2cd   :  { %1003 = vmatpush3.msra.mxu1 %v602_v44 }
 0x2ce   :  { %1004 = vmatprep.subr.mxu1 %v1163_v0 }
 0x2cf   :  { %1005 = vmatpush3.msra.mxu1 %v601_v45 }
 0x2d0   :  { %1006 = vmatprep.subr.mxu1 %v1163_v0 }
 0x2d1   :  { %1007 = vmatpush3.msra.mxu1 %v600_v46 }
 0x2d2   :  { %1008 = vmatprep.subr.mxu1 %v1163_v0 }
 0x2d3   :  { %1009 = vmatpush3.msra.mxu1 %v599_v52 }
 0x2d4   :  { %1010 = vmatprep.subr.mxu1 %v1163_v0 }
 0x2d5   :  { %1011 = vmatpush3.msra.mxu1 %v598_v53 }
 0x2d6   :  { %1012 = vmatprep.subr.mxu1 %v1163_v0 }
 0x2d7   :  { %1013 = vmatpush3.msra.mxu1 %v597_v54 }
 0x378   :  { %v498_v48 = vpop.f32.mrf.mxu1 }
 0x379   :  { %v499_v49 = vadd.f32 %v702_v47, %v498_v48 }
 0x37a   :  { %v946_v50 = vpop.f32.mrf.mxu1 }
 0x37b   :  { %v502_v51 = vmax.f32 %v499_v49, 0.0 }
 0x37d   :  { %980 = vmatmul.mubr.f32.vlgmr.msra.gmra.mxu0 %v502_v51 }
 0x43d   :  { %v592_v56 = vpop.f32.mrf.mxu0 }
 0x43e   :  { %v593_v57 = vadd.f32 %v703_v55, %v592_v56 }
 0x43f   :  { %v981_v58 = vpop.f32.mrf.mxu0 }
 0x440   :  { %v596_v59 = vmax.f32 %v593_v57, 0.0 }
 0x442   :  { %1015 = vmatmul.mubr.f32.vlgmr.msra.gmra.mxu1 %v596_v59 }
 0x502   :  { %v686_v61 = vpop.f32.mrf.mxu1 }
 0x503   :  { %v687_v62 = vadd.f32 %v704_v60, %v686_v61 }
 0x504   :  { %v1016_v63 = vpop.f32.mrf.mxu1 }
 0x505   :  { %690 = vst [vmem:[%s1416_s13] sm:$0xff] %v687_v62 }
 0x506   :  { %695 = vsyncpa [#allocation3], 1 }
 0x507   :  { %696 = vsyncpa [#allocation5], 1 }
 0x508   :  { %697 = vsyncpa [#allocation8], 1 }
 0x509   :  { %698 = vsyncpa [#allocation11], 1 }

</bundles_post_ra>
